<compile_context>
chip_gen: v7x
topology: tpu7x:2x2x1
jax: 0.10.0
libtpu: 0.0.40
codegen_flags: <defaults>
</compile_context>

<pallas_src>
import jax
import jax.numpy as jnp
from jax.experimental import pallas as pl
from jax.experimental.pallas import tpu as pltpu

NEG_SLOPE = 0.01  # PyTorch LeakyReLU default


def _leaky_relu(v):
    return jnp.where(v >= 0, v, NEG_SLOPE * v)


def general_encoder_kernel(
    # inputs
    x_ref,
    wfe_ref, bfe_ref,      # feature_extractor Linear            (Dp -> Fp)
    w1_ref, b1_ref,        # fused fc1  [speaker | attr]          (Fp -> 2Hp)
    w2_ref, b2_ref,        # fused block-diagonal fc2             (2Hp -> 2Hp)
    wr_ref, br_ref,        # reconstructor on [spk | attr]        (2Hp -> Fp)
    wc_ref, bc_ref,        # speaker_cls on [spk | attr] (attr rows are zero)
    # outputs
    feats_ref, proj_ref, cls_ref, sa_ref,
):
    def mm(a, w_ref):
        w = w_ref[...]
        # cast activation to the weight dtype (bf16 fast path on v6e/v7x),
        # always accumulate in f32 on the MXU.
        return jnp.dot(a.astype(w.dtype), w, preferred_element_type=jnp.float32)

    x = x_ref[...]

    # feats = feature_extractor(x)
    feats = mm(x, wfe_ref) + bfe_ref[...]
    feats_ref[...] = feats

    # fused speaker_encoder.fc1 / attr_predictor.fc1 + leaky_relu
    h = _leaky_relu(mm(feats, w1_ref) + b1_ref[...])
    # fused fc2 (block-diag) + leaky_relu (MLP) + leaky_relu (activation_1/3)
    sa = _leaky_relu(_leaky_relu(mm(h, w2_ref) + b2_ref[...]))
    sa_ref[...] = sa                                   # [spk_emb | attr_emb]

    # reconstructor(concat(spk_embed, attr_embed)) -- single K=2Hp matmul
    proj_ref[...] = mm(sa, wr_ref) + br_ref[...]

    # speaker_cls + softmax over classes (padded classes carry -1e30 bias
    # so exp() underflows to exactly 0 and they drop out of the sum).
    logits = mm(sa, wc_ref) + bc_ref[...]
    m = jnp.max(logits, axis=1, keepdims=True)
    e = jnp.exp(logits - m)
    # approx=True would move the divide to the otherwise-idle EUP, but exact
    # division keeps the 1e-5 f32 correctness check below valid.
    cls_ref[...] = e * pl.reciprocal(jnp.sum(e, axis=1, keepdims=True), approx=False)


# ----------------------------------------------------------------------------
# Wrapper: padding / fusion of parameters + pallas_call plumbing
# ----------------------------------------------------------------------------

def _round_up(n, m):
    return (n + m - 1) // m * m


def _pad2(a, rows, cols):
    return jnp.pad(a, ((0, rows - a.shape[0]), (0, cols - a.shape[1])))


def _pick_block_batch(n):
    # Single tile when it fits comfortably (grid=(1,)); otherwise 512-row tiles
    # (measured sweet spot).  Multiple of 16 keeps bf16 sublane packing happy.
    # For v7x, larger batches naturally give an even parallel grid (>=2 tiles).
    if n <= 512:
        return _round_up(n, 16)
    return 512


def pack_params(params, matmul_dtype=jnp.float32):
    """Pad every feature dim to a multiple of 128 and fuse parallel branches."""
    in_dim, F = params["wfe"].shape
    H = params["w1"].shape[1]
    C = params["wc"].shape[1]
    Dp, Fp, Hp, Cp = (_round_up(d, 128) for d in (in_dim, F, H, C))

    f32 = jnp.float32
    zH = jnp.zeros((Hp, Hp), f32)

    wfe = _pad2(params["wfe"], Dp, Fp).astype(matmul_dtype)
    bfe = _pad2(params["bfe"], 1, Fp)

    # fused fc1: feats @ [w1 | wa1]  -> (B, 2Hp)
    w1a1 = jnp.concatenate(
        [_pad2(params["w1"], Fp, Hp), _pad2(params["wa1"], Fp, Hp)], axis=1
    ).astype(matmul_dtype)
    b1a1 = jnp.concatenate(
        [_pad2(params["b1"], 1, Hp), _pad2(params["ba1"], 1, Hp)], axis=1)

    # fused fc2: block-diagonal [[w2, 0], [0, wa2]]  -> (2Hp, 2Hp)
    w2a2 = jnp.concatenate(
        [jnp.concatenate([_pad2(params["w2"], Hp, Hp), zH], axis=1),
         jnp.concatenate([zH, _pad2(params["wa2"], Hp, Hp)], axis=1)], axis=0
    ).astype(matmul_dtype)
    b2a2 = jnp.concatenate(
        [_pad2(params["b2"], 1, Hp), _pad2(params["ba2"], 1, Hp)], axis=1)

    # reconstructor: rows laid out as [spk rows | attr rows] to match sa
    wr = jnp.concatenate(
        [_pad2(params["wr"][:H], Hp, Fp), _pad2(params["wr"][H:], Hp, Fp)], axis=0
    ).astype(matmul_dtype)
    br = _pad2(params["br"], 1, Fp)

    # classifier acts on sa = [spk | attr]; attr rows are zero
    wc = jnp.concatenate(
        [_pad2(params["wc"], Hp, Cp), jnp.zeros((Hp, Cp), f32)], axis=0
    ).astype(matmul_dtype)
    bc = _pad2(params["bc"], 1, Cp)
    if Cp > C:
        bc = bc + jnp.concatenate(
            [jnp.zeros((1, C), f32), jnp.full((1, Cp - C), -1e30, f32)], axis=1)

    packed = dict(wfe=wfe, bfe=bfe, w1a1=w1a1, b1a1=b1a1, w2a2=w2a2, b2a2=b2a2,
                  wr=wr, br=br, wc=wc, bc=bc)
    dims = dict(in_dim=in_dim, F=F, H=H, C=C, Dp=Dp, Fp=Fp, Hp=Hp, Cp=Cp)
    return packed, dims


_WEIGHT_ORDER = ("wfe", "bfe", "w1a1", "b1a1", "w2a2", "b2a2", "wr", "br", "wc", "bc")


def general_encoder_forward(x, params, *, matmul_dtype=jnp.float32, block_batch=None):
    """x: (N, in_dim) float32.  Returns dict matching the PyTorch module output."""
    packed, d = pack_params(params, matmul_dtype)
    N = x.shape[0]
    bb = block_batch if block_batch is not None else _pick_block_batch(N)
    Np = _round_up(N, bb)
    nb = Np // bb

    # Pad batch and in_dim once, outside the kernel.
    x_p = _pad2(x.astype(jnp.float32), Np, d["Dp"])

    def batch_spec(width):
        return pl.BlockSpec((bb, width), lambda i: (i, 0))

    def full_spec(a):
        return pl.BlockSpec(a.shape, lambda i: (0, 0))

    in_specs = [batch_spec(d["Dp"])] + [full_spec(packed[k]) for k in _WEIGHT_ORDER]
    out_specs = (
        batch_spec(d["Fp"]),        # feats
        batch_spec(d["Fp"]),        # proj
        batch_spec(d["Cp"]),        # spk_cls (class-padded, lane dense)
        batch_spec(2 * d["Hp"]),    # [spk_emb | attr_emb] slab
    )
    out_shape = (
        jax.ShapeDtypeStruct((Np, d["Fp"]), jnp.float32),
        jax.ShapeDtypeStruct((Np, d["Fp"]), jnp.float32),
        jax.ShapeDtypeStruct((Np, d["Cp"]), jnp.float32),
        jax.ShapeDtypeStruct((Np, 2 * d["Hp"]), jnp.float32),
    )

    # Advisory cost hint so XLA schedules around the custom call sensibly.
    flops = 2 * Np * (d["Dp"] * d["Fp"] + d["Fp"] * 2 * d["Hp"]
                      + 4 * d["Hp"] * d["Hp"] + 2 * d["Hp"] * d["Fp"]
                      + 2 * d["Hp"] * d["Cp"])
    param_bytes = sum(int(a.size) * a.dtype.itemsize for a in packed.values())
    bytes_accessed = (4 * Np * d["Dp"] + param_bytes
                      + 4 * Np * (2 * d["Fp"] + d["Cp"] + 2 * d["Hp"]))
    cost = pl.CostEstimate(flops=int(flops),
                           transcendentals=int(Np * d["Cp"]),
                           bytes_accessed=int(bytes_accessed))

    feats, proj, cls, sa = pl.pallas_call(
        general_encoder_kernel,
        out_shape=out_shape,
        grid_spec=pltpu.PrefetchScalarGridSpec(
            num_scalar_prefetch=0,
            grid=(nb,),
            in_specs=in_specs,
            out_specs=out_specs,
        ),
        compiler_params=pltpu.CompilerParams(
            dimension_semantics=("parallel",),
        ),
        cost_estimate=cost,
    )(x_p, *(packed[k] for k in _WEIGHT_ORDER))

    F, H, C, Hp = d["F"], d["H"], d["C"], d["Hp"]
    return {
        "feats": feats[:N, :F],
        "proj": proj[:N, :F],
        "spk_cls": cls[:N, :C],
        "spk_emb": sa[:N, :H],
        "attr_emb": sa[:N, Hp:Hp + H],
    }


# ----------------------------------------------------------------------------
# Parameter init (PyTorch Linear-style) and pure-JAX reference
# ----------------------------------------------------------------------------

def init_params(key, in_dim, feat_dim, hidden_dim, num_classes):
    """Deterministic PyTorch-Linear-style init.  Weights stored as (in, out)."""
    def linear(key, fan_in, fan_out):
        kw, kb = jax.random.split(key)
        bound = 1.0 / (fan_in ** 0.5)
        w = jax.random.uniform(kw, (fan_in, fan_out), jnp.float32, -bound, bound)
        b = jax.random.uniform(kb, (1, fan_out), jnp.float32, -bound, bound)
        return w, b

    keys = jax.random.split(key, 7)
    wfe, bfe = linear(keys[0], in_dim, feat_dim)          # synthetic feature_extractor
    w1, b1 = linear(keys[1], feat_dim, hidden_dim)        # speaker_encoder fc1
    w2, b2 = linear(keys[2], hidden_dim, hidden_dim)      # speaker_encoder fc2
    wc, bc = linear(keys[3], hidden_dim, num_classes)     # speaker_cls
    wa1, ba1 = linear(keys[4], feat_dim, hidden_dim)      # attr_predictor fc1
    wa2, ba2 = linear(keys[5], hidden_dim, hidden_dim)    # attr_predictor fc2
    wr, br = linear(keys[6], 2 * hidden_dim, feat_dim)    # reconstructor (2H -> F)
    return {"wfe": wfe, "bfe": bfe, "w1": w1, "b1": b1, "w2": w2, "b2": b2,
            "wc": wc, "bc": bc, "wa1": wa1, "ba1": ba1, "wa2": wa2, "ba2": ba2,
            "wr": wr, "br": br}


def reference_forward(x, p):
    lrelu = lambda v: jnp.where(v >= 0, v, NEG_SLOPE * v)
    feats = x @ p["wfe"] + p["bfe"]
    spk = lrelu(lrelu(lrelu(feats @ p["w1"] + p["b1"]) @ p["w2"] + p["b2"]))
    attr = lrelu(lrelu(lrelu(feats @ p["wa1"] + p["ba1"]) @ p["wa2"] + p["ba2"]))
    spk_cls = jax.nn.softmax(spk @ p["wc"] + p["bc"], axis=1)
    proj = jnp.concatenate([spk, attr], axis=1) @ p["wr"] + p["br"]
    return {"feats": feats, "proj": proj, "spk_cls": spk_cls,
            "spk_emb": spk, "attr_emb": attr}


if __name__ == "__main__":
    key = jax.random.PRNGKey(0)
    k_x, k_p = jax.random.split(key)

    batch, in_dim, feat_dim, hidden_dim, num_classes = 16, 16, 32, 32, 10
    x = jax.random.normal(k_x, (batch, in_dim), jnp.float32)
    params = init_params(k_p, in_dim, feat_dim, hidden_dim, num_classes)
    ref = reference_forward(x, params)
    names = ("feats", "proj", "spk_cls", "spk_emb", "attr_emb")

    # f32 matmul operands: tight correctness check.
    out = general_encoder_forward(x, params)
    out = jax.tree_util.tree_map(jax.block_until_ready, out)
    for name in names:
        assert out[name].shape == ref[name].shape, name
        assert jnp.allclose(out[name], ref[name], atol=1e-5, rtol=1e-5), name

    # bf16 matmul operands (v6e/v7x MXU fast path): loose correctness check.
    out_bf16 = general_encoder_forward(x, params, matmul_dtype=jnp.bfloat16)
    out_bf16 = jax.tree_util.tree_map(jax.block_until_ready, out_bf16)
    for name in names:
        assert out_bf16[name].shape == ref[name].shape, name
        assert jnp.allclose(out_bf16[name], ref[name], atol=1e-1, rtol=1e-1), name

    print("KERNEL_OK")
</pallas_src>

<mosaic_0001>
module attributes {stable_mosaic.version = 11 : i64} {
  func.func @general_encoder_kernel(%arg0: i32, %arg1: memref<16x128xf32, #tpu.memory_space<vmem>>, %arg2: memref<128x128xf32, #tpu.memory_space<vmem>>, %arg3: memref<1x128xf32, #tpu.memory_space<vmem>>, %arg4: memref<128x256xf32, #tpu.memory_space<vmem>>, %arg5: memref<1x256xf32, #tpu.memory_space<vmem>>, %arg6: memref<256x256xf32, #tpu.memory_space<vmem>>, %arg7: memref<1x256xf32, #tpu.memory_space<vmem>>, %arg8: memref<256x128xf32, #tpu.memory_space<vmem>>, %arg9: memref<1x128xf32, #tpu.memory_space<vmem>>, %arg10: memref<256x128xf32, #tpu.memory_space<vmem>>, %arg11: memref<1x128xf32, #tpu.memory_space<vmem>>, %arg12: memref<16x128xf32, #tpu.memory_space<vmem>>, %arg13: memref<16x128xf32, #tpu.memory_space<vmem>>, %arg14: memref<16x128xf32, #tpu.memory_space<vmem>>, %arg15: memref<16x256xf32, #tpu.memory_space<vmem>>) attributes {dimension_semantics = [#tpu.dimension_semantics<parallel>], iteration_bounds = array<i64: 1>, scalar_prefetch = 0 : i64, scratch_operands = 0 : i64, tpu.core_type = #tpu.core_type<tc>, window_params = [{transform_indices = @transform_0, window_bounds = array<i64: 16, 128>}, {pipeline_mode = #tpu.pipeline_mode<synchronous>, transform_indices = @transform_1, window_bounds = array<i64: 128, 128>}, {pipeline_mode = #tpu.pipeline_mode<synchronous>, transform_indices = @transform_2, window_bounds = array<i64: 1, 128>}, {pipeline_mode = #tpu.pipeline_mode<synchronous>, transform_indices = @transform_3, window_bounds = array<i64: 128, 256>}, {pipeline_mode = #tpu.pipeline_mode<synchronous>, transform_indices = @transform_4, window_bounds = array<i64: 1, 256>}, {pipeline_mode = #tpu.pipeline_mode<synchronous>, transform_indices = @transform_5, window_bounds = array<i64: 256, 256>}, {pipeline_mode = #tpu.pipeline_mode<synchronous>, transform_indices = @transform_6, window_bounds = array<i64: 1, 256>}, {pipeline_mode = #tpu.pipeline_mode<synchronous>, transform_indices = @transform_7, window_bounds = array<i64: 256, 128>}, {pipeline_mode = #tpu.pipeline_mode<synchronous>, transform_indices = @transform_8, window_bounds = array<i64: 1, 128>}, {pipeline_mode = #tpu.pipeline_mode<synchronous>, transform_indices = @transform_9, window_bounds = array<i64: 256, 128>}, {pipeline_mode = #tpu.pipeline_mode<synchronous>, transform_indices = @transform_10, window_bounds = array<i64: 1, 128>}, {transform_indices = @transform_11, window_bounds = array<i64: 16, 128>}, {transform_indices = @transform_12, window_bounds = array<i64: 16, 128>}, {transform_indices = @transform_13, window_bounds = array<i64: 16, 128>}, {transform_indices = @transform_14, window_bounds = array<i64: 16, 256>}]} {
    %c0 = arith.constant 0 : index
    %c0_0 = arith.constant 0 : index
    %0 = vector.load %arg1[%c0, %c0_0] : memref<16x128xf32, #tpu.memory_space<vmem>>, vector<16x128xf32>
    %c0_1 = arith.constant 0 : index
    %c0_2 = arith.constant 0 : index
    %1 = vector.load %arg2[%c0_1, %c0_2] : memref<128x128xf32, #tpu.memory_space<vmem>>, vector<128x128xf32>
    %cst = arith.constant dense<0.000000e+00> : vector<16x128xf32>
    %2 = tpu.matmul %0, %1, %cst {dimension_numbers = #tpu.dot_dimension_numbers<[1], [0], [0], [1], [0, 0, 1, 1], [], []>} : vector<16x128xf32>, vector<128x128xf32>, vector<16x128xf32> -> vector<16x128xf32>
    %c0_3 = arith.constant 0 : index
    %c0_4 = arith.constant 0 : index
    %3 = vector.load %arg3[%c0_3, %c0_4] : memref<1x128xf32, #tpu.memory_space<vmem>>, vector<1x128xf32>
    %4 = vector.broadcast %3 : vector<1x128xf32> to vector<16x128xf32>
    %5 = arith.addf %2, %4 : vector<16x128xf32>
    %c0_5 = arith.constant 0 : index
    %c0_6 = arith.constant 0 : index
    %6 = vector.load %arg12[%c0_5, %c0_6] : memref<16x128xf32, #tpu.memory_space<vmem>>, vector<16x128xf32>
    tpu.vector_store %arg12[%c0_5, %c0_6], %5 {strides = array<i32>} : memref<16x128xf32, #tpu.memory_space<vmem>>, vector<16x128xf32>,
    %c0_7 = arith.constant 0 : index
    %c0_8 = arith.constant 0 : index
    %7 = vector.load %arg4[%c0_7, %c0_8] : memref<128x256xf32, #tpu.memory_space<vmem>>, vector<128x256xf32>
    %cst_9 = arith.constant dense<0.000000e+00> : vector<16x256xf32>
    %8 = tpu.matmul %5, %7, %cst_9 {dimension_numbers = #tpu.dot_dimension_numbers<[1], [0], [0], [1], [0, 0, 1, 1], [], []>} : vector<16x128xf32>, vector<128x256xf32>, vector<16x256xf32> -> vector<16x256xf32>
    %c0_10 = arith.constant 0 : index
    %c0_11 = arith.constant 0 : index
    %9 = vector.load %arg5[%c0_10, %c0_11] : memref<1x256xf32, #tpu.memory_space<vmem>>, vector<1x256xf32>
    %10 = vector.broadcast %9 : vector<1x256xf32> to vector<16x256xf32>
    %11 = arith.addf %8, %10 : vector<16x256xf32>
    %cst_12 = arith.constant 0.000000e+00 : f32
    %12 = vector.broadcast %cst_12 : f32 to vector<16x256xf32>
    %13 = arith.cmpf oge, %11, %12 : vector<16x256xf32>
    %cst_13 = arith.constant 0.00999999977 : f32
    %14 = vector.broadcast %cst_13 : f32 to vector<16x256xf32>
    %15 = arith.mulf %14, %11 : vector<16x256xf32>
    %16 = arith.select %13, %11, %15 : vector<16x256xi1>, vector<16x256xf32>
    %c0_14 = arith.constant 0 : index
    %c0_15 = arith.constant 0 : index
    %17 = vector.load %arg6[%c0_14, %c0_15] : memref<256x256xf32, #tpu.memory_space<vmem>>, vector<256x256xf32>
    %cst_16 = arith.constant dense<0.000000e+00> : vector<16x256xf32>
    %18 = tpu.matmul %16, %17, %cst_16 {dimension_numbers = #tpu.dot_dimension_numbers<[1], [0], [0], [1], [0, 0, 1, 1], [], []>} : vector<16x256xf32>, vector<256x256xf32>, vector<16x256xf32> -> vector<16x256xf32>
    %c0_17 = arith.constant 0 : index
    %c0_18 = arith.constant 0 : index
    %19 = vector.load %arg7[%c0_17, %c0_18] : memref<1x256xf32, #tpu.memory_space<vmem>>, vector<1x256xf32>
    %20 = vector.broadcast %19 : vector<1x256xf32> to vector<16x256xf32>
    %21 = arith.addf %18, %20 : vector<16x256xf32>
    %cst_19 = arith.constant 0.000000e+00 : f32
    %22 = vector.broadcast %cst_19 : f32 to vector<16x256xf32>
    %23 = arith.cmpf oge, %21, %22 : vector<16x256xf32>
    %cst_20 = arith.constant 0.00999999977 : f32
    %24 = vector.broadcast %cst_20 : f32 to vector<16x256xf32>
    %25 = arith.mulf %24, %21 : vector<16x256xf32>
    %26 = arith.select %23, %21, %25 : vector<16x256xi1>, vector<16x256xf32>
    %cst_21 = arith.constant 0.000000e+00 : f32
    %27 = vector.broadcast %cst_21 : f32 to vector<16x256xf32>
    %28 = arith.cmpf oge, %26, %27 : vector<16x256xf32>
    %cst_22 = arith.constant 0.00999999977 : f32
    %29 = vector.broadcast %cst_22 : f32 to vector<16x256xf32>
    %30 = arith.mulf %29, %26 : vector<16x256xf32>
    %31 = arith.select %28, %26, %30 : vector<16x256xi1>, vector<16x256xf32>
    %c0_23 = arith.constant 0 : index
    %c0_24 = arith.constant 0 : index
    %32 = vector.load %arg15[%c0_23, %c0_24] : memref<16x256xf32, #tpu.memory_space<vmem>>, vector<16x256xf32>
    tpu.vector_store %arg15[%c0_23, %c0_24], %31 {strides = array<i32>} : memref<16x256xf32, #tpu.memory_space<vmem>>, vector<16x256xf32>,
    %c0_25 = arith.constant 0 : index
    %c0_26 = arith.constant 0 : index
    %33 = vector.load %arg8[%c0_25, %c0_26] : memref<256x128xf32, #tpu.memory_space<vmem>>, vector<256x128xf32>
    %cst_27 = arith.constant dense<0.000000e+00> : vector<16x128xf32>
    %34 = tpu.matmul %31, %33, %cst_27 {dimension_numbers = #tpu.dot_dimension_numbers<[1], [0], [0], [1], [0, 0, 1, 1], [], []>} : vector<16x256xf32>, vector<256x128xf32>, vector<16x128xf32> -> vector<16x128xf32>
    %c0_28 = arith.constant 0 : index
    %c0_29 = arith.constant 0 : index
    %35 = vector.load %arg9[%c0_28, %c0_29] : memref<1x128xf32, #tpu.memory_space<vmem>>, vector<1x128xf32>
    %36 = vector.broadcast %35 : vector<1x128xf32> to vector<16x128xf32>
    %37 = arith.addf %34, %36 : vector<16x128xf32>
    %c0_30 = arith.constant 0 : index
    %c0_31 = arith.constant 0 : index
    %38 = vector.load %arg13[%c0_30, %c0_31] : memref<16x128xf32, #tpu.memory_space<vmem>>, vector<16x128xf32>
    tpu.vector_store %arg13[%c0_30, %c0_31], %37 {strides = array<i32>} : memref<16x128xf32, #tpu.memory_space<vmem>>, vector<16x128xf32>,
    %c0_32 = arith.constant 0 : index
    %c0_33 = arith.constant 0 : index
    %39 = vector.load %arg10[%c0_32, %c0_33] : memref<256x128xf32, #tpu.memory_space<vmem>>, vector<256x128xf32>
    %cst_34 = arith.constant dense<0.000000e+00> : vector<16x128xf32>
    %40 = tpu.matmul %31, %39, %cst_34 {dimension_numbers = #tpu.dot_dimension_numbers<[1], [0], [0], [1], [0, 0, 1, 1], [], []>} : vector<16x256xf32>, vector<256x128xf32>, vector<16x128xf32> -> vector<16x128xf32>
    %c0_35 = arith.constant 0 : index
    %c0_36 = arith.constant 0 : index
    %41 = vector.load %arg11[%c0_35, %c0_36] : memref<1x128xf32, #tpu.memory_space<vmem>>, vector<1x128xf32>
    %42 = vector.broadcast %41 : vector<1x128xf32> to vector<16x128xf32>
    %43 = arith.addf %40, %42 : vector<16x128xf32>
    %cst_37 = arith.constant dense<0xFF800000> : vector<16xf32>
    %44 = vector.multi_reduction <maximumf>, %43, %cst_37 [1] : vector<16x128xf32> to vector<16xf32>
    %45 = vector.shape_cast %44 : vector<16xf32> to vector<16x1xf32>
    %46 = vector.broadcast %45 : vector<16x1xf32> to vector<16x128xf32>
    %47 = arith.subf %43, %46 : vector<16x128xf32>
    %48 = math.exp %47 : vector<16x128xf32>
    %cst_38 = arith.constant dense<0.000000e+00> : vector<16xf32>
    %49 = vector.multi_reduction <add>, %48, %cst_38 [1] : vector<16x128xf32> to vector<16xf32>
    %50 = vector.shape_cast %49 : vector<16xf32> to vector<16x1xf32>
    %51 = tpu.reciprocal %50 : vector<16x1xf32> -> vector<16x1xf32>
    %52 = vector.broadcast %51 : vector<16x1xf32> to vector<16x128xf32>
    %53 = arith.mulf %48, %52 : vector<16x128xf32>
    %c0_39 = arith.constant 0 : index
    %c0_40 = arith.constant 0 : index
    %54 = vector.load %arg14[%c0_39, %c0_40] : memref<16x128xf32, #tpu.memory_space<vmem>>, vector<16x128xf32>
    tpu.vector_store %arg14[%c0_39, %c0_40], %53 {strides = array<i32>} : memref<16x128xf32, #tpu.memory_space<vmem>>, vector<16x128xf32>,
    return
  }
  func.func @transform_0(%arg0: i32) -> (i32, i32) {
    %c0_i32 = arith.constant 0 : i32
    %c0_i32_0 = arith.constant 0 : i32
    return %arg0, %c0_i32 : i32, i32
  }
  func.func @transform_1(%arg0: i32) -> (i32, i32) {
    %c0_i32 = arith.constant 0 : i32
    %c0_i32_0 = arith.constant 0 : i32
    %c0_i32_1 = arith.constant 0 : i32
    return %c0_i32, %c0_i32_0 : i32, i32
  }
  func.func @transform_2(%arg0: i32) -> (i32, i32) {
    %c0_i32 = arith.constant 0 : i32
    %c0_i32_0 = arith.constant 0 : i32
    %c0_i32_1 = arith.constant 0 : i32
    return %c0_i32, %c0_i32_0 : i32, i32
  }
  func.func @transform_3(%arg0: i32) -> (i32, i32) {
    %c0_i32 = arith.constant 0 : i32
    %c0_i32_0 = arith.constant 0 : i32
    %c0_i32_1 = arith.constant 0 : i32
    return %c0_i32, %c0_i32_0 : i32, i32
  }
  func.func @transform_4(%arg0: i32) -> (i32, i32) {
    %c0_i32 = arith.constant 0 : i32
    %c0_i32_0 = arith.constant 0 : i32
    %c0_i32_1 = arith.constant 0 : i32
    return %c0_i32, %c0_i32_0 : i32, i32
  }
  func.func @transform_5(%arg0: i32) -> (i32, i32) {
    %c0_i32 = arith.constant 0 : i32
    %c0_i32_0 = arith.constant 0 : i32
    %c0_i32_1 = arith.constant 0 : i32
    return %c0_i32, %c0_i32_0 : i32, i32
  }
  func.func @transform_6(%arg0: i32) -> (i32, i32) {
    %c0_i32 = arith.constant 0 : i32
    %c0_i32_0 = arith.constant 0 : i32
    %c0_i32_1 = arith.constant 0 : i32
    return %c0_i32, %c0_i32_0 : i32, i32
  }
  func.func @transform_7(%arg0: i32) -> (i32, i32) {
    %c0_i32 = arith.constant 0 : i32
    %c0_i32_0 = arith.constant 0 : i32
    %c0_i32_1 = arith.constant 0 : i32
    return %c0_i32, %c0_i32_0 : i32, i32
  }
  func.func @transform_8(%arg0: i32) -> (i32, i32) {
    %c0_i32 = arith.constant 0 : i32
    %c0_i32_0 = arith.constant 0 : i32
    %c0_i32_1 = arith.constant 0 : i32
    return %c0_i32, %c0_i32_0 : i32, i32
  }
  func.func @transform_9(%arg0: i32) -> (i32, i32) {
    %c0_i32 = arith.constant 0 : i32
    %c0_i32_0 = arith.constant 0 : i32
    %c0_i32_1 = arith.constant 0 : i32
    return %c0_i32, %c0_i32_0 : i32, i32
  }
  func.func @transform_10(%arg0: i32) -> (i32, i32) {
    %c0_i32 = arith.constant 0 : i32
    %c0_i32_0 = arith.constant 0 : i32
    %c0_i32_1 = arith.constant 0 : i32
    return %c0_i32, %c0_i32_0 : i32, i32
  }
  func.func @transform_11(%arg0: i32) -> (i32, i32) {
    %c0_i32 = arith.constant 0 : i32
    %c0_i32_0 = arith.constant 0 : i32
    return %arg0, %c0_i32 : i32, i32
  }
  func.func @transform_12(%arg0: i32) -> (i32, i32) {
    %c0_i32 = arith.constant 0 : i32
    %c0_i32_0 = arith.constant 0 : i32
    return %arg0, %c0_i32 : i32, i32
  }
  func.func @transform_13(%arg0: i32) -> (i32, i32) {
    %c0_i32 = arith.constant 0 : i32
    %c0_i32_0 = arith.constant 0 : i32
    return %arg0, %c0_i32 : i32, i32
  }
  func.func @transform_14(%arg0: i32) -> (i32, i32) {
    %c0_i32 = arith.constant 0 : i32
    %c0_i32_0 = arith.constant 0 : i32
    return %arg0, %c0_i32 : i32, i32
  }
}

</mosaic_0001>

<bundles_post_ra>
// kernel: tpu_custom_call.1
= control target key start
LH: loop header
LB: loop body
LE: loop exit
PB: predicated region body
PF: predicated region fallthrough
CT: control target
= control target key end

     0   :  { %20 = vsyncpa [#allocation3], 0  ;;  %s1710_s0 = inlined_call_operand.hbm [shape: f32[16,128], index: 0, kind: input, shape index: {}]   ;;  %s1711_s1 = inlined_call_operand.hbm [shape: f32[128,128], index: 1, kind: input, shape index: {}]   ;;  %s1712_s2 = inlined_call_operand.vmem [shape: f32[1,128], index: 2, kind: input, shape index: {}]   ;;  %s1713_s3 = inlined_call_operand.hbm [shape: f32[128,256], index: 3, kind: input, shape index: {}]   ;;  %s1714_s4 = inlined_call_operand.vmem [shape: f32[1,256], index: 4, kind: input, shape index: {}]   ;;  %s1715_s5 = inlined_call_operand.hbm [shape: f32[256,256], index: 5, kind: input, shape index: {}]   ;;  %s1716_s6 = inlined_call_operand.vmem [shape: f32[1,256], index: 6, kind: input, shape index: {}]   ;;  %s1717_s7 = inlined_call_operand.hbm [shape: f32[256,128], index: 7, kind: input, shape index: {}]   ;;  %s1718_s8 = inlined_call_operand.vmem [shape: f32[1,128], index: 8, kind: input, shape index: {}]   ;;  %s1719_s9 = inlined_call_operand.hbm [shape: f32[256,128], index: 9, kind: input, shape index: {}]   ;;  %s1720_s10 = inlined_call_operand.vmem [shape: f32[1,128], index: 10, kind: input, shape index: {}]   ;;  %s1721_s11 = inlined_call_operand.hbm [shape: f32[16,128], index: 11, kind: output, shape index: {0}]   ;;  %s1722_s12 = inlined_call_operand.hbm [shape: f32[16,128], index: 12, kind: output, shape index: {1}]   ;;  %s1723_s13 = inlined_call_operand.hbm [shape: f32[16,128], index: 13, kind: output, shape index: {2}]   ;;  %s1724_s14 = inlined_call_operand.hbm [shape: f32[16,256], index: 14, kind: output, shape index: {3}]  }
   0x1   :  { %21 = vsyncpa [#allocation6], 0 }
   0x2   :  { %22 = vsyncpa [#allocation9], 0 }
   0x3   :  { %23 = vsyncpa [#allocation12], 0 }
   0x4   :  { %24 = vsyncpa [#allocation4], 0 }
   0x5   :  { %25 = vsyncpa [#allocation15], 0 }
   0x6   :  { %26 = vsyncpa [#allocation18], 0  ;;  %s1441_s29 = smov [#allocation5]   ;;  %s1207_s17 = scalar_lea.hbm %s1711_s1, 2048 }
   0x7   :  { %s44_s30 = sshll.u32 %s1441_s29, 4  ;;  %p1208_p0 = scmp.ne.s32.totalorder %s1711_s1, %s1207_s17  ;;  %s45_s30 = int_to_ptr.vmem [resolvable:$true] %s44_s30 }
   0x8   :  { %p1211_p1 = scmp.lt.u32.totalorder %s1207_s17, %s1711_s1 }
   0xa   :  { %p1213_p2 = pnand %p1211_p1, %p1208_p0 }
   0xc   :  { %1216 = shalt.err (!%p1213_p2)
}
   0xd   :  { %s1217_s22 = scalar_lea.vmem %s45_s30, 2048  ;;  %p1222_p4 = scmp.lt.s32.totalorder %s45_s30, %s45_s30 }
   0xe   :  { %p1218_p3 = scmp.ne.s32.totalorder %s45_s30, %s1217_s22  ;;  %p1223_p5 = scmp.lt.s32.totalorder %s1217_s22, %s1217_s22 }
  0x10   :  { %p1224_p6 = por %p1223_p5, %p1222_p4 }
  0x12   :  { %p1225_p7 = pnand %p1224_p6, %p1218_p3 }
  0x14   :  { %1228 = shalt.err (!%p1225_p7)
}
  0x15   :  { %s1442_s23 = smov 128   ;;  %s1443_s24 = smov 8  }
  0x16   :  { %50 = dma.hbm_to_vmem [thread:$0]  %s1711_s1, 2048, %s45_s30, [#allocation6], %s1442_s23, %s1442_s23, %s1443_s24  }
  0x17   :  { %s1444_s27 = smov [#allocation8]   ;;  %s1445_s29 = smov [#allocation2]  }
  0x18   :  { %s72_s28 = sshll.u32 %s1444_s27, 4  ;;  %s32_s15 = sshll.u32 %s1445_s29, 4  ;;  %s73_s28 = int_to_ptr.vmem [resolvable:$true] %s72_s28  ;;  %s33_s15 = int_to_ptr.vmem [resolvable:$true] %s32_s15 }
  0x19   :  { %s1229_s18 = scalar_lea.hbm %s1715_s5, 8192 }
  0x1a   :  { %p1230_p8 = scmp.ne.s32.totalorder %s1715_s5, %s1229_s18  ;;  %p1233_p9 = scmp.lt.u32.totalorder %s1229_s18, %s1715_s5 }
  0x1c   :  { %p1235_p10 = pnand %p1233_p9, %p1230_p8 }
  0x1e   :  { %1238 = shalt.err (!%p1235_p10)
}
  0x1f   :  { %s1239_s1 = scalar_lea.vmem %s73_s28, 8192  ;;  %p1244_p12 = scmp.lt.s32.totalorder %s73_s28, %s73_s28 }
  0x20   :  { %p1240_p11 = scmp.ne.s32.totalorder %s73_s28, %s1239_s1  ;;  %p1245_p13 = scmp.lt.s32.totalorder %s1239_s1, %s1239_s1 }
  0x22   :  { %p1246_p0 = por %p1245_p13, %p1244_p12 }
  0x24   :  { %p1247_p1 = pnand %p1246_p0, %p1240_p11 }
  0x26   :  { %1250 = shalt.err (!%p1247_p1)
}
  0x27   :  { %s1446_s30 = smov 256   ;;  %s1447_s25 = smov 16  }
  0x28   :  { %78 = dma.hbm_to_vmem [thread:$0]  %s1715_s5, 8192, %s73_s28, [#allocation9], %s1446_s30, %s1446_s30, %s1447_s25  }
  0x29   :  { %s1251_s17 = scalar_lea.hbm %s1710_s0, 256 }
  0x2a   :  { %p1252_p2 = scmp.ne.s32.totalorder %s1710_s0, %s1251_s17  ;;  %p1255_p3 = scmp.lt.u32.totalorder %s1251_s17, %s1710_s0 }
  0x2c   :  { %p1257_p4 = pnand %p1255_p3, %p1252_p2 }
  0x2e   :  { %1260 = shalt.err (!%p1257_p4)
}
  0x2f   :  { %s1261_s22 = scalar_lea.vmem %s33_s15, 256  ;;  %p1266_p6 = scmp.lt.s32.totalorder %s33_s15, %s33_s15 }
  0x30   :  { %p1262_p5 = scmp.ne.s32.totalorder %s33_s15, %s1261_s22  ;;  %p1267_p7 = scmp.lt.s32.totalorder %s1261_s22, %s1261_s22 }
  0x32   :  { %p1268_p8 = por %p1267_p7, %p1266_p6 }
  0x34   :  { %p1269_p9 = pnand %p1268_p8, %p1262_p5 }
  0x36   :  { %1272 = shalt.err (!%p1269_p9)
}
  0x37   :  { %38 = dma.hbm_to_vmem [thread:$0]  %s1710_s0, 256, %s33_s15, [#allocation3], %s1442_s23, %s1442_s23, %s1443_s24  }
  0x38   :  { %s1448_s1 = smov [#allocation7]   ;;  %s1449_s27 = smov [#allocation10]  }
  0x39   :  { %s58_s26 = sshll.u32 %s1448_s1, 4  ;;  %s86_s29 = sshll.u32 %s1449_s27, 4  ;;  %s59_s26 = int_to_ptr.vmem [resolvable:$true] %s58_s26  ;;  %s87_s29 = int_to_ptr.vmem [resolvable:$true] %s86_s29 }
  0x3a   :  { %s1273_s18 = scalar_lea.hbm %s1713_s3, 4096 }
  0x3b   :  { %p1274_p10 = scmp.ne.s32.totalorder %s1713_s3, %s1273_s18  ;;  %p1277_p11 = scmp.lt.u32.totalorder %s1273_s18, %s1713_s3 }
  0x3d   :  { %p1279_p12 = pnand %p1277_p11, %p1274_p10 }
  0x3f   :  { %1282 = shalt.err (!%p1279_p12)
}
  0x40   :  { %s1283_s0 = scalar_lea.vmem %s59_s26, 4096  ;;  %p1288_p0 = scmp.lt.s32.totalorder %s59_s26, %s59_s26 }
  0x41   :  { %p1284_p13 = scmp.ne.s32.totalorder %s59_s26, %s1283_s0  ;;  %p1289_p1 = scmp.lt.s32.totalorder %s1283_s0, %s1283_s0 }
  0x43   :  { %p1290_p2 = por %p1289_p1, %p1288_p0 }
  0x45   :  { %p1291_p3 = pnand %p1290_p2, %p1284_p13 }
  0x47   :  { %1294 = shalt.err (!%p1291_p3)
}
  0x48   :  { %64 = dma.hbm_to_vmem [thread:$0]  %s1713_s3, 4096, %s59_s26, [#allocation6], %s1446_s30, %s1446_s30, %s1447_s25  }
  0x49   :  { %s1295_s27 = scalar_lea.hbm %s1717_s7, 4096 }
  0x4a   :  { %p1296_p4 = scmp.ne.s32.totalorder %s1717_s7, %s1295_s27  ;;  %p1299_p5 = scmp.lt.u32.totalorder %s1295_s27, %s1717_s7 }
  0x4c   :  { %p1301_p6 = pnand %p1299_p5, %p1296_p4 }
  0x4e   :  { %1304 = shalt.err (!%p1301_p6)
}
  0x4f   :  { %s1305_s20 = scalar_lea.vmem %s87_s29, 4096  ;;  %p1310_p8 = scmp.lt.s32.totalorder %s87_s29, %s87_s29 }
  0x50   :  { %p1306_p7 = scmp.ne.s32.totalorder %s87_s29, %s1305_s20  ;;  %p1311_p9 = scmp.lt.s32.totalorder %s1305_s20, %s1305_s20 }
  0x52   :  { %p1312_p10 = por %p1311_p9, %p1310_p8 }
  0x54   :  { %p1313_p11 = pnand %p1312_p10, %p1306_p7 }
  0x56   :  { %1316 = shalt.err (!%p1313_p11)
}
  0x57   :  { %92 = dma.hbm_to_vmem [thread:$0]  %s1717_s7, 4096, %s87_s29, [#allocation9], %s1442_s23, %s1442_s23, %s1443_s24  }
  0x58   :  { %s1450_s21 = smov [#allocation11]   ;;  %s1317_s5 = scalar_lea.hbm %s1719_s9, 4096 }
  0x59   :  { %s100_s22 = sshll.u32 %s1450_s21, 4  ;;  %p1318_p12 = scmp.ne.s32.totalorder %s1719_s9, %s1317_s5  ;;  %s101_s22 = int_to_ptr.vmem [resolvable:$true] %s100_s22 }
  0x5a   :  { %p1321_p13 = scmp.lt.u32.totalorder %s1317_s5, %s1719_s9 }
  0x5c   :  { %p1323_p0 = pnand %p1321_p13, %p1318_p12 }
  0x5e   :  { %1326 = shalt.err (!%p1323_p0)
}
  0x5f   :  { %s1327_s17 = scalar_lea.vmem %s101_s22, 4096  ;;  %p1332_p2 = scmp.lt.s32.totalorder %s101_s22, %s101_s22 }
  0x60   :  { %p1328_p1 = scmp.ne.s32.totalorder %s101_s22, %s1327_s17  ;;  %p1333_p3 = scmp.lt.s32.totalorder %s1327_s17, %s1327_s17 }
  0x62   :  { %p1334_p4 = por %p1333_p3, %p1332_p2 }
  0x64   :  { %p1335_p5 = pnand %p1334_p4, %p1328_p1 }
  0x66   :  { %1338 = shalt.err (!%p1335_p5)
}
  0x67   :  { %106 = dma.hbm_to_vmem [thread:$0]  %s1719_s9, 4096, %s101_s22, [#allocation12], %s1442_s23, %s1442_s23, %s1443_s24  }
  0x68   :  { %1427 = dma.done.wait [#allocation3], 256  }
  0x69   :  { %1428 = vsyncadd [#allocation3], 4294967040 }
  0x6a   :  { %1429 = dma.done.wait [#allocation6], 6144  }
  0x6b   :  { %1430 = vsyncadd [#allocation6], 4294961152 }
  0x6c   :  { %1431 = dma.done.wait [#allocation9], 12288  }
  0x6d   :  { %1432 = vsyncadd [#allocation9], 4294955008 }
  0x6e   :  { %1433 = dma.done.wait [#allocation12], 4096  }
  0x6f   :  { %1434 = vsyncadd [#allocation12], 4294963200  ;;  %v129_v0 = vld [vmem:[#allocation5] sm:$0xff]  ;;  %v130_v1 = vld [vmem:[#allocation5 + $0x8] sm:$0xff]  ;;  %s1453_s22 = smov [#allocation13]  }
  0x70   :  { %v131_v2 = vld [vmem:[#allocation5 + $0x10] sm:$0xff]  ;;  %v992_v3 = vpack.c.bf16 %v130_v1, %v129_v0  ;;  %v132_v4 = vld [vmem:[#allocation5 + $0x18] sm:$0xff]  ;;  %v133_v6 = vld [vmem:[#allocation5 + $0x20] sm:$0xff]  ;;  %s798_s0 = sshll.u32 %s1453_s22, 4  ;;  %s1643_s0 = int_to_ptr.vmem [resolvable:$true] %s798_s0 }
  0x71   :  { %v996_v5 = vpack.c.bf16 %v132_v4, %v131_v2  ;;  %v134_v7 = vld [vmem:[#allocation5 + $0x28] sm:$0xff]  ;;  %v135_v9 = vld [vmem:[#allocation5 + $0x30] sm:$0xff]  ;;  %v136_v10 = vld [vmem:[#allocation5 + $0x38] sm:$0xff] }
  0x72   :  { %993 = vmatprep.subr.bf16.mxu0 %v992_v3  ;;  %v1000_v8 = vpack.c.bf16 %v134_v7, %v133_v6  ;;  %v127_v11 = vld [vmem:[#allocation2] sm:$0xff]  ;;  %v230_v12 = vld [vmem:[#allocation7 + $0x8] sm:$0xff]  ;;  %v232_v13 = vld [vmem:[#allocation7 + $0x18] sm:$0xff]  ;;  %v1004_v24 = vpack.c.bf16 %v136_v10, %v135_v9  ;;  %v1451_v10 = vmov 0.0  }
  0x73   :  { %995 = vmatpush3.bf16.msra.mxu0 %v992_v3  ;;  %989 = vmatprep.mubr.f32.mxu0 %v127_v11  ;;  %v229_v14 = vld [vmem:[#allocation7] sm:$0xff]  ;;  %v1024_v15 = vpack.c.bf16 %v232_v13, %v230_v12  ;;  %v231_v16 = vld [vmem:[#allocation7 + $0x10] sm:$0xff]  ;;  %v234_v17 = vld [vmem:[#allocation7 + $0x28] sm:$0xff] }
  0x74   :  { %997 = vmatprep.subr.bf16.mxu0 %v996_v5  ;;  %v236_v18 = vld [vmem:[#allocation7 + $0x38] sm:$0xff]  ;;  %v1026_v19 = vpack.c.bf16 %v231_v16, %v229_v14  ;;  %v233_v21 = vld [vmem:[#allocation7 + $0x20] sm:$0xff]  ;;  %v235_v22 = vld [vmem:[#allocation7 + $0x30] sm:$0xff]  ;;  %337 = vmatprep.mubr.f32.mxu1 %v1451_v10 }
  0x75   :  { %v1028_v20 = vpack.c.bf16 %v236_v18, %v234_v17  ;;  %v238_v23 = vld [vmem:[#allocation7 + $0x48] sm:$0xff]  ;;  %1025 = vmatprep.subr.bf16.mxu1 %v1024_v15  ;;  %v240_v25 = vld [vmem:[#allocation7 + $0x58] sm:$0xff]  ;;  %v137_v26 = vld [vmem:[#allocation5 + $0x40] sm:$0xff]  ;;  %v1030_v28 = vpack.c.bf16 %v235_v22, %v233_v21 }
  0x76   :  { %v138_v27 = vld [vmem:[#allocation5 + $0x48] sm:$0xff]  ;;  %1027 = vmatpush1.bf16.msra.mxu1 %v1026_v19  ;;  %v1032_v29 = vpack.c.bf16 %v240_v25, %v238_v23  ;;  %v237_v30 = vld [vmem:[#allocation7 + $0x40] sm:$0xff]  ;;  %v239_v31 = vld [vmem:[#allocation7 + $0x50] sm:$0xff] }
  0x77   :  { %999 = vmatpush3.bf16.msra.mxu0 %v996_v5  ;;  %1029 = vmatprep.subr.bf16.mxu1 %v1028_v20  ;;  %v242_v32 = vld [vmem:[#allocation7 + $0x68] sm:$0xff]  ;;  %v244_v33 = vld [vmem:[#allocation7 + $0x78] sm:$0xff]  ;;  %v1008_v34 = vpack.c.bf16 %v138_v27, %v137_v26  ;;  %v139_v35 = vld [vmem:[#allocation5 + $0x50] sm:$0xff]  ;;  %v1034_v37 = vpack.c.bf16 %v239_v31, %v237_v30 }
  0x78   :  { %1001 = vmatprep.subr.bf16.mxu0 %v1000_v8  ;;  %v140_v36 = vld [vmem:[#allocation5 + $0x58] sm:$0xff]  ;;  %v1036_v38 = vpack.c.bf16 %v244_v33, %v242_v32  ;;  %v241_v39 = vld [vmem:[#allocation7 + $0x60] sm:$0xff]  ;;  %v243_v40 = vld [vmem:[#allocation7 + $0x70] sm:$0xff] }
  0x79   :  { %v246_v41 = vld [vmem:[#allocation7 + $0x88] sm:$0xff]  ;;  %v248_v42 = vld [vmem:[#allocation7 + $0x98] sm:$0xff]  ;;  %v1012_v43 = vpack.c.bf16 %v140_v36, %v139_v35  ;;  %v141_v44 = vld [vmem:[#allocation5 + $0x60] sm:$0xff]  ;;  %v1038_v46 = vpack.c.bf16 %v243_v40, %v241_v39 }
  0x7a   :  { %1031 = vmatpush1.bf16.msra.mxu1 %v1030_v28  ;;  %v142_v45 = vld [vmem:[#allocation5 + $0x68] sm:$0xff]  ;;  %v1040_v47 = vpack.c.bf16 %v248_v42, %v246_v41  ;;  %v245_v48 = vld [vmem:[#allocation7 + $0x80] sm:$0xff]  ;;  %v247_v49 = vld [vmem:[#allocation7 + $0x90] sm:$0xff] }
  0x7b   :  { %1003 = vmatpush3.bf16.msra.mxu0 %v1000_v8  ;;  %1033 = vmatprep.subr.bf16.mxu1 %v1032_v29  ;;  %v250_v50 = vld [vmem:[#allocation7 + $0xa8] sm:$0xff]  ;;  %v252_v51 = vld [vmem:[#allocation7 + $0xb8] sm:$0xff]  ;;  %v1016_v52 = vpack.c.bf16 %v142_v45, %v141_v44  ;;  %v143_v53 = vld [vmem:[#allocation5 + $0x70] sm:$0xff]  ;;  %v1042_v55 = vpack.c.bf16 %v247_v49, %v245_v48 }
  0x7c   :  { %1005 = vmatprep.subr.bf16.mxu0 %v1004_v24  ;;  %v144_v54 = vld [vmem:[#allocation5 + $0x78] sm:$0xff]  ;;  %v1044_v56 = vpack.c.bf16 %v252_v51, %v250_v50  ;;  %v249_v57 = vld [vmem:[#allocation7 + $0xa0] sm:$0xff]  ;;  %v251_v58 = vld [vmem:[#allocation7 + $0xb0] sm:$0xff] }
  0x7d   :  { %v254_v59 = vld [vmem:[#allocation7 + $0xc8] sm:$0xff]  ;;  %v256_v60 = vld [vmem:[#allocation7 + $0xd8] sm:$0xff]  ;;  %v1020_v61 = vpack.c.bf16 %v144_v54, %v143_v53  ;;  %v1046_v62 = vpack.c.bf16 %v251_v58, %v249_v57  ;;  %v253_v0 = vld [vmem:[#allocation7 + $0xc0] sm:$0xff] }
  0x7e   :  { %1035 = vmatpush1.bf16.msra.mxu1 %v1034_v37  ;;  %v1048_v63 = vpack.c.bf16 %v256_v60, %v254_v59  ;;  %v255_v1 = vld [vmem:[#allocation7 + $0xd0] sm:$0xff]  ;;  %v128_v3 = vld [vmem:[#allocation2 + $0x8] sm:$0xff]  ;;  %v258_v4 = vld [vmem:[#allocation7 + $0xe8] sm:$0xff] }
  0x7f   :  { %1007 = vmatpush3.bf16.msra.mxu0 %v1004_v24  ;;  %1037 = vmatprep.subr.bf16.mxu1 %v1036_v38  ;;  %v1050_v2 = vpack.c.bf16 %v255_v1, %v253_v0  ;;  %v260_v5 = vld [vmem:[#allocation7 + $0xf8] sm:$0xff]  ;;  %v257_v7 = vld [vmem:[#allocation7 + $0xe0] sm:$0xff]  ;;  %v259_v8 = vld [vmem:[#allocation7 + $0xf0] sm:$0xff] }
  0x80   :  { %1009 = vmatprep.subr.bf16.mxu0 %v1008_v34  ;;  %v1052_v6 = vpack.c.bf16 %v260_v5, %v258_v4  ;;  %v1054_v9 = vpack.c.bf16 %v259_v8, %v257_v7  ;;  %v363_v11 = vld [vmem:[#allocation8 + $0x8] sm:$0xff]  ;;  %v365_v12 = vld [vmem:[#allocation8 + $0x18] sm:$0xff]  ;;  %v362_v13 = vld [vmem:[#allocation8] sm:$0xff] }
  0x81   :  { %v1056_v14 = vpack.c.bf16 %v365_v12, %v363_v11  ;;  %v364_v15 = vld [vmem:[#allocation8 + $0x10] sm:$0xff]  ;;  %v367_v16 = vld [vmem:[#allocation8 + $0x28] sm:$0xff]  ;;  %v369_v17 = vld [vmem:[#allocation8 + $0x38] sm:$0xff] }
  0x82   :  { %1039 = vmatpush1.bf16.msra.mxu1 %v1038_v46  ;;  %v1058_v18 = vpack.c.bf16 %v364_v15, %v362_v13  ;;  %v1060_v19 = vpack.c.bf16 %v369_v17, %v367_v16  ;;  %v366_v20 = vld [vmem:[#allocation8 + $0x20] sm:$0xff]  ;;  %v368_v21 = vld [vmem:[#allocation8 + $0x30] sm:$0xff]  ;;  %v371_v22 = vld [vmem:[#allocation8 + $0x48] sm:$0xff] }
  0x83   :  { %1011 = vmatpush3.bf16.msra.mxu0 %v1008_v34  ;;  %1041 = vmatprep.subr.bf16.mxu1 %v1040_v47  ;;  %v373_v23 = vld [vmem:[#allocation8 + $0x58] sm:$0xff]  ;;  %v1062_v24 = vpack.c.bf16 %v368_v21, %v366_v20  ;;  %v370_v26 = vld [vmem:[#allocation8 + $0x40] sm:$0xff]  ;;  %v372_v27 = vld [vmem:[#allocation8 + $0x50] sm:$0xff] }
  0x84   :  { %1013 = vmatprep.subr.bf16.mxu0 %v1012_v43  ;;  %v1064_v25 = vpack.c.bf16 %v373_v23, %v371_v22  ;;  %v375_v28 = vld [vmem:[#allocation8 + $0x68] sm:$0xff]  ;;  %v377_v29 = vld [vmem:[#allocation8 + $0x78] sm:$0xff]  ;;  %v1066_v30 = vpack.c.bf16 %v372_v27, %v370_v26  ;;  %v374_v32 = vld [vmem:[#allocation8 + $0x60] sm:$0xff] }
  0x85   :  { %v1068_v31 = vpack.c.bf16 %v377_v29, %v375_v28  ;;  %v376_v33 = vld [vmem:[#allocation8 + $0x70] sm:$0xff]  ;;  %v379_v34 = vld [vmem:[#allocation8 + $0x88] sm:$0xff]  ;;  %v381_v35 = vld [vmem:[#allocation8 + $0x98] sm:$0xff] }
  0x86   :  { %1043 = vmatpush1.bf16.msra.mxu1 %v1042_v55  ;;  %v1070_v36 = vpack.c.bf16 %v376_v33, %v374_v32  ;;  %v1072_v37 = vpack.c.bf16 %v381_v35, %v379_v34  ;;  %v378_v38 = vld [vmem:[#allocation8 + $0x80] sm:$0xff]  ;;  %v380_v39 = vld [vmem:[#allocation8 + $0x90] sm:$0xff]  ;;  %v383_v40 = vld [vmem:[#allocation8 + $0xa8] sm:$0xff] }
  0x87   :  { %1015 = vmatpush3.bf16.msra.mxu0 %v1012_v43  ;;  %1045 = vmatprep.subr.bf16.mxu1 %v1044_v56  ;;  %v385_v41 = vld [vmem:[#allocation8 + $0xb8] sm:$0xff]  ;;  %v1074_v42 = vpack.c.bf16 %v380_v39, %v378_v38  ;;  %v382_v44 = vld [vmem:[#allocation8 + $0xa0] sm:$0xff]  ;;  %v384_v45 = vld [vmem:[#allocation8 + $0xb0] sm:$0xff] }
  0x88   :  { %1017 = vmatprep.subr.bf16.mxu0 %v1016_v52  ;;  %v1076_v43 = vpack.c.bf16 %v385_v41, %v383_v40  ;;  %v387_v46 = vld [vmem:[#allocation8 + $0xc8] sm:$0xff]  ;;  %v389_v47 = vld [vmem:[#allocation8 + $0xd8] sm:$0xff]  ;;  %v1078_v48 = vpack.c.bf16 %v384_v45, %v382_v44  ;;  %v386_v50 = vld [vmem:[#allocation8 + $0xc0] sm:$0xff] }
  0x89   :  { %v1080_v49 = vpack.c.bf16 %v389_v47, %v387_v46  ;;  %v388_v51 = vld [vmem:[#allocation8 + $0xd0] sm:$0xff]  ;;  %v393_v53 = vld [vmem:[#allocation8 + $0xf8] sm:$0xff]  ;;  %v390_v56 = vld [vmem:[#allocation8 + $0xe0] sm:$0xff] }
  0x8a   :  { %1047 = vmatpush1.bf16.msra.mxu1 %v1046_v62  ;;  %v1082_v54 = vpack.c.bf16 %v388_v51, %v386_v50  ;;  %v392_v57 = vld [vmem:[#allocation8 + $0xf0] sm:$0xff]  ;;  %v395_v58 = vld [vmem:[#allocation8 + $0x108] sm:$0xff]  ;;  %v397_v59 = vld [vmem:[#allocation8 + $0x118] sm:$0xff] }
  0x8b   :  { %1019 = vmatpush3.bf16.msra.mxu0 %v1016_v52  ;;  %1049 = vmatprep.subr.bf16.mxu1 %v1048_v63  ;;  %v391_v52 = vld [vmem:[#allocation8 + $0xe8] sm:$0xff]  ;;  %v1086_v60 = vpack.c.bf16 %v392_v57, %v390_v56  ;;  %v394_v62 = vld [vmem:[#allocation8 + $0x100] sm:$0xff]  ;;  %v396_v63 = vld [vmem:[#allocation8 + $0x110] sm:$0xff] }
  0x8c   :  { %1021 = vmatprep.subr.bf16.mxu0 %v1020_v61  ;;  %v1084_v55 = vpack.c.bf16 %v393_v53, %v391_v52  ;;  %v399_v0 = vld [vmem:[#allocation8 + $0x128] sm:$0xff]  ;;  %v401_v1 = vld [vmem:[#allocation8 + $0x138] sm:$0xff]  ;;  %v398_v4 = vld [vmem:[#allocation8 + $0x120] sm:$0xff] }
  0x8d   :  { %v400_v5 = vld [vmem:[#allocation8 + $0x130] sm:$0xff]  ;;  %v405_v7 = vld [vmem:[#allocation8 + $0x158] sm:$0xff]  ;;  %v402_v11 = vld [vmem:[#allocation8 + $0x140] sm:$0xff] }
  0x8e   :  { %1051 = vmatpush1.bf16.msra.mxu1 %v1050_v2  ;;  %v1090_v2 = vpack.c.bf16 %v396_v63, %v394_v62  ;;  %v1094_v8 = vpack.c.bf16 %v400_v5, %v398_v4  ;;  %v404_v12 = vld [vmem:[#allocation8 + $0x150] sm:$0xff]  ;;  %v407_v13 = vld [vmem:[#allocation8 + $0x168] sm:$0xff]  ;;  %v406_v17 = vld [vmem:[#allocation8 + $0x160] sm:$0xff] }
  0x8f   :  { %1023 = vmatpush3.bf16.msra.mxu0 %v1020_v61  ;;  %1053 = vmatprep.subr.bf16.mxu1 %v1052_v6  ;;  %v1088_v61 = vpack.c.bf16 %v397_v59, %v395_v58  ;;  %v403_v6 = vld [vmem:[#allocation8 + $0x148] sm:$0xff]  ;;  %v1098_v15 = vpack.c.bf16 %v404_v12, %v402_v11  ;;  %v413_v20 = vld [vmem:[#allocation8 + $0x198] sm:$0xff]  ;;  %v410_v23 = vld [vmem:[#allocation8 + $0x180] sm:$0xff] }
  0x90   :  { %1057 = vmatprep.subr.bf16.mxu0 %v1056_v14  ;;  %v409_v14 = vld [vmem:[#allocation8 + $0x178] sm:$0xff]  ;;  %v414_v29 = vld [vmem:[#allocation8 + $0x1a0] sm:$0xff]  ;;  %v860_v32 = vld [vmem:[%s1712_s2] ss:$0 sm:$0xff] }
  0x91   :  { %v1100_v16 = vpack.c.bf16 %v409_v14, %v407_v13  ;;  %v417_v26 = vld [vmem:[#allocation8 + $0x1b8] sm:$0xff]  ;;  %v418_v40 = vld [vmem:[#allocation8 + $0x1c0] sm:$0xff]  ;;  %v420_v41 = vld [vmem:[#allocation8 + $0x1d0] sm:$0xff] }
  0x92   :  { %990 = vmatmul.mubr.f32.vlgmr.msra.gmra.mrb[0].mxu0 %v128_v3  ;;  %1055 = vmatpush1.bf16.msra.mxu1 %v1054_v9  ;;  %v1092_v3 = vpack.c.bf16 %v401_v1, %v399_v0  ;;  %v1096_v9 = vpack.c.bf16 %v405_v7, %v403_v6  ;;  %v421_v38 = vld [vmem:[#allocation8 + $0x1d8] sm:$0xff]  ;;  %v422_v46 = vld [vmem:[#allocation8 + $0x1e0] sm:$0xff]  ;;  %v424_v47 = vld [vmem:[#allocation8 + $0x1f0] sm:$0xff] }
  0x93   :  { %1059 = vmatpush1.bf16.msra.mxu0 %v1058_v18  ;;  %v408_v18 = vld [vmem:[#allocation8 + $0x170] sm:$0xff]  ;;  %v425_v44 = vld [vmem:[#allocation8 + $0x1f8] sm:$0xff]  ;;  %v560_v50 = vld [vmem:[#allocation10 + $0x88] sm:$0xff] }
  0x94   :  { %1061 = vmatprep.subr.bf16.mxu0 %v1060_v19  ;;  %v411_v19 = vld [vmem:[#allocation8 + $0x188] sm:$0xff]  ;;  %v1102_v21 = vpack.c.bf16 %v408_v18, %v406_v17  ;;  %v561_v53 = vld [vmem:[#allocation10 + $0x90] sm:$0xff]  ;;  %v546_v58 = vld [vmem:[#allocation10 + $0x18] sm:$0xff] }
  0x95   :  { %v1104_v22 = vpack.c.bf16 %v413_v20, %v411_v19  ;;  %v544_v52 = vld [vmem:[#allocation10 + $0x8] sm:$0xff]  ;;  %v545_v57 = vld [vmem:[#allocation10 + $0x10] sm:$0xff]  ;;  %v563_v59 = vld [vmem:[#allocation10 + $0xa0] sm:$0xff] }
  0x96   :  { %v547_v63 = vld [vmem:[#allocation10 + $0x20] sm:$0xff]  ;;  %v548_v0 = vld [vmem:[#allocation10 + $0x28] sm:$0xff]  ;;  %v565_v1 = vld [vmem:[#allocation10 + $0xb0] sm:$0xff] }
  0x97   :  { %1063 = vmatpush1.bf16.msra.mxu0 %v1062_v24  ;;  %v412_v24 = vld [vmem:[#allocation8 + $0x190] sm:$0xff]  ;;  %v550_v6 = vld [vmem:[#allocation10 + $0x38] sm:$0xff]  ;;  %v567_v7 = vld [vmem:[#allocation10 + $0xc0] sm:$0xff] }
  0x98   :  { %1065 = vmatprep.subr.bf16.mxu0 %v1064_v25  ;;  %v415_v25 = vld [vmem:[#allocation8 + $0x1a8] sm:$0xff]  ;;  %v1106_v27 = vpack.c.bf16 %v412_v24, %v410_v23  ;;  %v549_v5 = vld [vmem:[#allocation10 + $0x30] sm:$0xff]  ;;  %v551_v12 = vld [vmem:[#allocation10 + $0x40] sm:$0xff] }
  0x99   :  { %v1108_v28 = vpack.c.bf16 %v417_v26, %v415_v25  ;;  %v552_v13 = vld [vmem:[#allocation10 + $0x48] sm:$0xff]  ;;  %v569_v14 = vld [vmem:[#allocation10 + $0xd0] sm:$0xff]  ;;  %v554_v19 = vld [vmem:[#allocation10 + $0x58] sm:$0xff] }
  0x9a   :  { %v553_v18 = vld [vmem:[#allocation10 + $0x50] sm:$0xff] }
  0x9b   :  { %1067 = vmatpush1.bf16.msra.mxu0 %v1066_v30  ;;  %v416_v30 = vld [vmem:[#allocation8 + $0x1b0] sm:$0xff]  ;;  %v1142_v20 = vpack.c.bf16 %v554_v19, %v553_v18 }
  0x9c   :  { %1069 = vmatprep.subr.bf16.mxu0 %v1068_v31  ;;  %v1110_v31 = vpack.c.bf16 %v416_v30, %v414_v29  ;;  %v261_v24 = vld [vmem:[%s1714_s4] sm:$0x3] }
  0x9f   :  { %1071 = vmatpush1.bf16.msra.mxu0 %v1070_v36 }
  0xa0   :  { %1073 = vmatprep.subr.bf16.mxu0 %v1072_v37  ;;  %v419_v37 = vld [vmem:[#allocation8 + $0x1c8] sm:$0xff] }
  0xa1   :  { %v1112_v39 = vpack.c.bf16 %v421_v38, %v419_v37 }
  0xa3   :  { %1075 = vmatpush1.bf16.msra.mxu0 %v1074_v42  ;;  %v1114_v42 = vpack.c.bf16 %v420_v41, %v418_v40 }
  0xa4   :  { %1077 = vmatprep.subr.bf16.mxu0 %v1076_v43  ;;  %v423_v43 = vld [vmem:[#allocation8 + $0x1e8] sm:$0xff] }
  0xa5   :  { %v1116_v45 = vpack.c.bf16 %v425_v44, %v423_v43  ;;  %v571_v44 = vld [vmem:[#allocation10 + $0xe0] sm:$0xff] }
  0xa7   :  { %1079 = vmatpush1.bf16.msra.mxu0 %v1078_v48  ;;  %v1118_v48 = vpack.c.bf16 %v424_v47, %v422_v46  ;;  %v555_v47 = vld [vmem:[#allocation10 + $0x60] sm:$0xff] }
  0xa8   :  { %1081 = vmatprep.subr.bf16.mxu0 %v1080_v49  ;;  %v559_v49 = vld [vmem:[#allocation10 + $0x80] sm:$0xff] }
  0xa9   :  { %v1120_v51 = vpack.c.bf16 %v560_v50, %v559_v49  ;;  %v573_v50 = vld [vmem:[#allocation10 + $0xf0] sm:$0xff] }
  0xab   :  { %1083 = vmatpush1.bf16.msra.mxu0 %v1082_v54  ;;  %v562_v54 = vld [vmem:[#allocation10 + $0x98] sm:$0xff]  ;;  %1121 = vmatprep.subr.bf16.mxu1 %v1120_v51 }
  0xac   :  { %1085 = vmatprep.subr.bf16.mxu0 %v1084_v55  ;;  %v1124_v56 = vpack.c.bf16 %v562_v54, %v561_v53  ;;  %v558_v53 = vld [vmem:[#allocation10 + $0x78] sm:$0xff] }
  0xaf   :  { %1087 = vmatpush1.bf16.msra.mxu0 %v1086_v60  ;;  %v564_v60 = vld [vmem:[#allocation10 + $0xa8] sm:$0xff] }
  0xb0   :  { %1089 = vmatprep.subr.bf16.mxu0 %v1088_v61  ;;  %v1126_v61 = vpack.c.bf16 %v546_v58, %v545_v57  ;;  %v1128_v62 = vpack.c.bf16 %v564_v60, %v563_v59  ;;  %v426_v58 = vld [vmem:[%s1716_s6] sm:$0x3] }
  0xb3   :  { %1091 = vmatpush1.bf16.msra.mxu0 %v1090_v2  ;;  %v566_v2 = vld [vmem:[#allocation10 + $0xb8] sm:$0xff] }
  0xb4   :  { %1093 = vmatprep.subr.bf16.mxu0 %v1092_v3  ;;  %v1130_v3 = vpack.c.bf16 %v548_v0, %v547_v63  ;;  %v1132_v4 = vpack.c.bf16 %v566_v2, %v565_v1 }
  0xb7   :  { %1095 = vmatpush1.bf16.msra.mxu0 %v1094_v8  ;;  %v568_v8 = vld [vmem:[#allocation10 + $0xc8] sm:$0xff] }
  0xb8   :  { %1097 = vmatprep.subr.bf16.mxu0 %v1096_v9  ;;  %v1134_v9 = vpack.c.bf16 %v550_v6, %v549_v5  ;;  %v1136_v11 = vpack.c.bf16 %v568_v8, %v567_v7  ;;  %v659_v7 = vld [vmem:[#allocation11] sm:$0xff]  ;;  %v660_v8 = vld [vmem:[#allocation11 + $0x8] sm:$0xff] }
  0xb9   :  { %v1154_v19 = vpack.c.bf16 %v660_v8, %v659_v7 }
  0xbb   :  { %1099 = vmatpush1.bf16.msra.mxu0 %v1098_v15  ;;  %v570_v15 = vld [vmem:[#allocation10 + $0xd8] sm:$0xff] }
  0xbc   :  { %1101 = vmatprep.subr.bf16.mxu0 %v1100_v16  ;;  %v1138_v16 = vpack.c.bf16 %v552_v13, %v551_v12  ;;  %v1140_v17 = vpack.c.bf16 %v570_v15, %v569_v14  ;;  %v677_v13 = vld [vmem:[#allocation11 + $0x90] sm:$0xff]  ;;  %v678_v14 = vld [vmem:[#allocation11 + $0x98] sm:$0xff] }
  0xbf   :  { %1103 = vmatpush1.bf16.msra.mxu0 %v1102_v21  ;;  %v263_v21 = vlaneseq }
  0xc0   :  { %1105 = vmatprep.subr.bf16.mxu0 %v1104_v22 }
  0xc1   :  { %v264_v22 = vshrl.u32 %v263_v21, 7  ;;  %v1156_v21 = vpack.c.bf16 %v678_v14, %v677_v13  ;;  %v862_v14 = vld [vmem:[%s1720_s10] ss:$0 sm:$0xff] }
  0xc3   :  { %1107 = vmatpush1.bf16.msra.mxu0 %v1106_v27  ;;  %v265_v23 = vsub.s32 0, %v264_v22  ;;  %v269_v25 = vsub.s32 1, %v264_v22 }
  0xc4   :  { %1109 = vmatprep.subr.bf16.mxu0 %v1108_v28 }
  0xc5   :  { %v266_v26 = vrot.slane %v261_v24, %v265_v23  ;;  %v270_v27 = vrot.slane %v261_v24, %v269_v25  ;;  %v431_v59 = vrot.slane %v426_v58, %v265_v23  ;;  %v435_v60 = vrot.slane %v426_v58, %v269_v25  ;;  %v661_v23 = vld [vmem:[#allocation11 + $0x10] sm:$0xff]  ;;  %v662_v24 = vld [vmem:[#allocation11 + $0x18] sm:$0xff]  ;;  %v672_v58 = vld [vmem:[#allocation11 + $0x68] sm:$0xff] }
  0xc7   :  { %1111 = vmatpush1.bf16.msra.mxu0 %v1110_v31 }
  0xc8   :  { %1113 = vmatprep.subr.bf16.mxu0 %v1112_v39 }
  0xcb   :  { %1115 = vmatpush1.bf16.msra.mxu0 %v1114_v42 }
  0xcc   :  { %1117 = vmatprep.subr.bf16.mxu0 %v1116_v45  ;;  %v572_v45 = vld [vmem:[#allocation10 + $0xe8] sm:$0xff] }
  0xcd   :  { %v1144_v46 = vpack.c.bf16 %v572_v45, %v571_v44 }
  0xcf   :  { %1119 = vmatpush1.bf16.msra.mxu0 %v1118_v48  ;;  %v556_v48 = vld [vmem:[#allocation10 + $0x68] sm:$0xff] }
  0xd0   :  { %v1146_v49 = vpack.c.bf16 %v556_v48, %v555_v47  ;;  %v668_v47 = vld [vmem:[#allocation11 + $0x48] sm:$0xff]  ;;  %v685_v48 = vld [vmem:[#allocation11 + $0xd0] sm:$0xff] }
 0x165   :  { %v991_v33 = vpop.f32.mrb[0].mxu0 }
 0x166   :  { %v224_v34 = vadd.f32 %v991_v33, %v860_v32  ;;  %v218_v35 = vpop.f32.mrb[1].mxu0 }
 0x167   :  { %v219_v36 = vadd.f32 %v860_v32, %v218_v35 }
 0x168   :  { %228 = vst [vmem:[#allocation13 + $0x8] sm:$0xff] %v224_v34 }
 0x169   :  { %227 = vst [vmem:[#allocation13] sm:$0xff] %v219_v36  ;;  %338 = vmatmul.mubr.f32.vlgmr.msra.gmra.mrb[0].mxu1 %v219_v36 }
 0x16a   :  { %343 = vmatprep.mubr.f32.mxu1 %v1451_v10  ;;  %v543_v10 = vld [vmem:[#allocation10] sm:$0xff] }
 0x16b   :  { %v1122_v55 = vpack.c.bf16 %v544_v52, %v543_v10  ;;  %v574_v10 = vld [vmem:[#allocation10 + $0xf8] sm:$0xff]  ;;  %v557_v52 = vld [vmem:[#allocation10 + $0x70] sm:$0xff] }
 0x16c   :  { %v1148_v51 = vpack.c.bf16 %v574_v10, %v573_v50  ;;  %v1150_v54 = vpack.c.bf16 %v558_v53, %v557_v52  ;;  %v670_v52 = vld [vmem:[#allocation11 + $0x58] sm:$0xff]  ;;  %v687_v53 = vld [vmem:[#allocation11 + $0xe0] sm:$0xff] }
 0x16d   :  { %344 = vmatmul.mubr.f32.gmra.mrb[2].mxu1 %v224_v34 }
 0x16e   :  { %1123 = vmatpush3.bf16.msra.mxu1 %v1122_v55  ;;  %v675_v55 = vld [vmem:[#allocation11 + $0x80] sm:$0xff] }
 0x16f   :  { %1125 = vmatprep.subr.bf16.mxu1 %v1124_v56  ;;  %v676_v56 = vld [vmem:[#allocation11 + $0x88] sm:$0xff] }
 0x170   :  { %v1152_v57 = vpack.c.bf16 %v676_v56, %v675_v55 }
 0x172   :  { %1127 = vmatpush3.bf16.msra.mxu1 %v1126_v61 }
 0x173   :  { %1129 = vmatprep.subr.bf16.mxu1 %v1128_v62 }
 0x176   :  { %1131 = vmatpush3.bf16.msra.mxu1 %v1130_v3 }
 0x177   :  { %1133 = vmatprep.subr.bf16.mxu1 %v1132_v4 }
 0x17a   :  { %1135 = vmatpush3.bf16.msra.mxu1 %v1134_v9 }
 0x17b   :  { %1137 = vmatprep.subr.bf16.mxu1 %v1136_v11 }
 0x17e   :  { %1139 = vmatpush3.bf16.msra.mxu1 %v1138_v16 }
 0x17f   :  { %1141 = vmatprep.subr.bf16.mxu1 %v1140_v17 }
 0x182   :  { %1143 = vmatpush3.bf16.msra.mxu1 %v1142_v20 }
 0x183   :  { %1145 = vmatprep.subr.bf16.mxu1 %v1144_v46  ;;  %v667_v46 = vld [vmem:[#allocation11 + $0x40] sm:$0xff] }
 0x184   :  { %v1170_v50 = vpack.c.bf16 %v668_v47, %v667_v46 }
 0x186   :  { %1147 = vmatpush3.bf16.msra.mxu1 %v1146_v49  ;;  %v686_v49 = vld [vmem:[#allocation11 + $0xd8] sm:$0xff] }
 0x187   :  { %1149 = vmatprep.subr.bf16.mxu1 %v1148_v51  ;;  %v1172_v10 = vpack.c.bf16 %v686_v49, %v685_v48  ;;  %v669_v51 = vld [vmem:[#allocation11 + $0x50] sm:$0xff] }
 0x188   :  { %v1174_v55 = vpack.c.bf16 %v670_v52, %v669_v51 }
 0x18a   :  { %1151 = vmatpush3.bf16.msra.mxu1 %v1150_v54  ;;  %v688_v54 = vld [vmem:[#allocation11 + $0xe8] sm:$0xff] }
 0x18b   :  { %1153 = vmatprep.subr.bf16.mxu1 %v1152_v57  ;;  %v1176_v56 = vpack.c.bf16 %v688_v54, %v687_v53  ;;  %v671_v57 = vld [vmem:[#allocation11 + $0x60] sm:$0xff] }
 0x23c   :  { %v339_v28 = vpop.f32.mrb[0].mxu1 }
 0x23d   :  { %v340_v29 = vadd.f32 %v339_v28, %v266_v26  ;;  %v341_v30 = vpop.f32.mrb[1].mxu1  ;;  %v680_v28 = vld [vmem:[#allocation11 + $0xa8] sm:$0xff] }
 0x23e   :  { %v342_v31 = vadd.f32 %v341_v30, %v270_v27 }
 0x23f   :  { %v354_v32 = vmul.f32 0.01, %v340_v29  ;;  %vm350_vm0 = vcmp.ge.f32.partialorder %v340_v29, 0.0 }
 0x240   :  { %v355_v33 = vmul.f32 0.01, %v342_v31  ;;  %v345_v34 = vpop.f32.mrb[2].mxu1  ;;  %vm351_vm1 = vcmp.ge.f32.partialorder %v342_v31, 0.0 }
 0x241   :  { %v346_v35 = vadd.f32 %v345_v34, %v266_v26  ;;  %v347_v36 = vpop.f32.mrb[3].mxu1  ;;  %v358_v40 = vsel %vm350_vm0, %v340_v29, %v354_v32  ;;  %v663_v34 = vld [vmem:[#allocation11 + $0x20] sm:$0xff] }
 0x242   :  { %v348_v37 = vadd.f32 %v347_v36, %v270_v27  ;;  %v359_v38 = vsel %vm351_vm1, %v342_v31, %v355_v33  ;;  %v679_v27 = vld [vmem:[#allocation11 + $0xa0] sm:$0xff]  ;;  %v1158_v31 = vpack.c.bf16 %v662_v24, %v661_v23  ;;  %v681_v36 = vld [vmem:[#allocation11 + $0xb0] sm:$0xff] }
 0x243   :  { %v356_v39 = vmul.f32 0.01, %v346_v35  ;;  %502 = vmatprep.mubr.f32.mxu0 %v359_v38  ;;  %vm352_vm3 = vcmp.ge.f32.partialorder %v346_v35, 0.0  ;;  %v1160_v33 = vpack.c.bf16 %v680_v28, %v679_v27 }
 0x244   :  { %v357_v41 = vmul.f32 0.01, %v348_v37  ;;  %503 = vmatmul.mubr.f32.vlgmr.msra.gmra.mrb[2].mxu0 %v358_v40  ;;  %vm353_vm2 = vcmp.ge.f32.partialorder %v348_v37, 0.0  ;;  %v665_v40 = vld [vmem:[#allocation11 + $0x30] sm:$0xff] }
 0x245   :  { %v360_v43 = vsel %vm352_vm3, %v346_v35, %v356_v39  ;;  %v664_v35 = vld [vmem:[#allocation11 + $0x28] sm:$0xff] }
 0x246   :  { %v361_v42 = vsel %vm353_vm2, %v348_v37, %v357_v41  ;;  %v682_v37 = vld [vmem:[#allocation11 + $0xb8] sm:$0xff]  ;;  %v1162_v38 = vpack.c.bf16 %v664_v35, %v663_v34 }
 0x247   :  { %508 = vmatprep.mubr.f32.mxu0 %v361_v42  ;;  %v1164_v39 = vpack.c.bf16 %v682_v37, %v681_v36  ;;  %v666_v41 = vld [vmem:[#allocation11 + $0x38] sm:$0xff]  ;;  %v683_v42 = vld [vmem:[#allocation11 + $0xc0] sm:$0xff] }
 0x248   :  { %509 = vmatmul.mubr.f32.gmra.mrb[4].mxu0 %v360_v43  ;;  %v684_v43 = vld [vmem:[#allocation11 + $0xc8] sm:$0xff]  ;;  %v1166_v44 = vpack.c.bf16 %v666_v41, %v665_v40 }
 0x249   :  { %v1168_v45 = vpack.c.bf16 %v684_v43, %v683_v42 }
 0x317   :  { %v504_v61 = vpop.f32.mrb[2].mxu0 }
 0x318   :  { %v505_v62 = vadd.f32 %v504_v61, %v431_v59  ;;  %v506_v63 = vpop.f32.mrb[3].mxu0  ;;  %v1178_v61 = vpack.c.bf16 %v672_v58, %v671_v57 }
 0x319   :  { %v507_v0 = vadd.f32 %v506_v63, %v435_v60  ;;  %v673_v63 = vld [vmem:[#allocation11 + $0x70] sm:$0xff] }
 0x31a   :  { %vm515_vm4 = vcmp.ge.f32.partialorder %v505_v62, 0.0  ;;  %v519_v1 = vmul.f32 0.01, %v505_v62 }
 0x31b   :  { %vm516_vm5 = vcmp.ge.f32.partialorder %v507_v0, 0.0  ;;  %v520_v2 = vmul.f32 0.01, %v507_v0  ;;  %v510_v3 = vpop.f32.mrb[4].mxu0 }
 0x31c   :  { %v523_v4 = vsel %vm515_vm4, %v505_v62, %v519_v1  ;;  %v511_v5 = vadd.f32 %v510_v3, %v431_v59  ;;  %v512_v6 = vpop.f32.mrb[5].mxu0  ;;  %v689_v59 = vld [vmem:[#allocation11 + $0xf0] sm:$0xff] }
 0x31d   :  { %vm527_vm6 = vcmp.ge.f32.partialorder %v523_v4, 0.0  ;;  %v531_v9 = vmul.f32 0.01, %v523_v4  ;;  %v513_v11 = vadd.f32 %v512_v6, %v435_v60  ;;  %v524_v12 = vsel %vm516_vm5, %v507_v0, %v520_v2  ;;  %v690_v60 = vld [vmem:[#allocation11 + $0xf8] sm:$0xff]  ;;  %v861_v3 = vld [vmem:[%s1718_s8] ss:$0 sm:$0xff] }
 0x31e   :  { %vm517_vm7 = vcmp.ge.f32.partialorder %v511_v5, 0.0  ;;  %v521_v15 = vmul.f32 0.01, %v511_v5  ;;  %vm528_vm8 = vcmp.ge.f32.partialorder %v524_v12, 0.0  ;;  %v532_v16 = vmul.f32 0.01, %v524_v12 }
 0x31f   :  { %vm518_vm9 = vcmp.ge.f32.partialorder %v513_v11, 0.0  ;;  %v522_v17 = vmul.f32 0.01, %v513_v11  ;;  %v1632_v18 = vsel %vm527_vm6, %v523_v4, %v531_v9  ;;  %v1180_v62 = vpack.c.bf16 %v690_v60, %v689_v59  ;;  %v674_v0 = vld [vmem:[#allocation11 + $0x78] sm:$0xff]  ;;  %s1452_s8 = smov [#allocation14]  }
 0x320   :  { %v536_v20 = vsel %vm528_vm8, %v524_v12, %v532_v16  ;;  %539 = vst [vmem:[#allocation17] sm:$0xff] %v1632_v18  ;;  %v525_v22 = vsel %vm517_vm7, %v511_v5, %v521_v15  ;;  %v1182_v1 = vpack.c.bf16 %v674_v0, %v673_v63  ;;  %s810_s10 = sshll.u32 %s1452_s8, 4  ;;  %s811_s10 = int_to_ptr.vmem [resolvable:$true] %s810_s10 }
 0x321   :  { %540 = vst [vmem:[#allocation17 + $0x8] sm:$0xff] %v536_v20  ;;  %646 = vmatprep.mubr.f32.mxu1 %v536_v20  ;;  %v526_v25 = vsel %vm518_vm9, %v513_v11, %v522_v17  ;;  %vm529_vm10 = vcmp.ge.f32.partialorder %v525_v22, 0.0  ;;  %v533_v26 = vmul.f32 0.01, %v525_v22  ;;  %s1339_s15 = scalar_lea.vmem %s811_s10, 256  ;;  %p1344_p7 = scmp.lt.s32.totalorder %s811_s10, %s811_s10 }
 0x322   :  { %647 = vmatmul.mubr.f32.vlgmr.msra.gmra.mrb[4].mxu1 %v1632_v18  ;;  %vm530_vm11 = vcmp.ge.f32.partialorder %v526_v25, 0.0  ;;  %v534_v29 = vmul.f32 0.01, %v526_v25  ;;  %p1340_p6 = scmp.ne.s32.totalorder %s811_s10, %s1339_s15  ;;  %p1345_p8 = scmp.lt.s32.totalorder %s1339_s15, %s1339_s15 }
 0x323   :  { %1155 = vmatpush3.bf16.msra.mxu1 %v1154_v19  ;;  %v537_v30 = vsel %vm529_vm10, %v525_v22, %v533_v26 }
 0x324   :  { %v538_v32 = vsel %vm530_vm11, %v526_v25, %v534_v29  ;;  %1157 = vmatprep.subr.bf16.mxu1 %v1156_v21  ;;  %541 = vst [vmem:[#allocation17 + $0x10] sm:$0xff] %v537_v30  ;;  %p1346_p9 = por %p1345_p8, %p1344_p7 }
 0x325   :  { %542 = vst [vmem:[#allocation17 + $0x18] sm:$0xff] %v538_v32  ;;  %651 = vmatprep.mubr.f32.mxu1 %v538_v32 }
 0x326   :  { %652 = vmatmul.mubr.f32.gmra.mrb[6].mxu1 %v537_v30  ;;  %p1347_p10 = pnand %p1346_p9, %p1340_p6 }
 0x327   :  { %1159 = vmatpush3.bf16.msra.mxu1 %v1158_v31  ;;  %762 = vmatprep.mubr.f32.mxu1 %v536_v20 }
 0x328   :  { %1161 = vmatprep.subr.bf16.mxu1 %v1160_v33 }
 0x32b   :  { %1163 = vmatpush3.bf16.msra.mxu1 %v1162_v38 }
 0x32c   :  { %1165 = vmatprep.subr.bf16.mxu1 %v1164_v39 }
 0x32f   :  { %1167 = vmatpush3.bf16.msra.mxu1 %v1166_v44 }
 0x330   :  { %1169 = vmatprep.subr.bf16.mxu1 %v1168_v45 }
 0x333   :  { %1171 = vmatpush3.bf16.msra.mxu1 %v1170_v50 }
 0x334   :  { %1173 = vmatprep.subr.bf16.mxu1 %v1172_v10 }
 0x337   :  { %1175 = vmatpush3.bf16.msra.mxu1 %v1174_v55 }
 0x338   :  { %1177 = vmatprep.subr.bf16.mxu1 %v1176_v56 }
 0x33b   :  { %1179 = vmatpush3.bf16.msra.mxu1 %v1178_v61 }
 0x33c   :  { %1181 = vmatprep.subr.bf16.mxu1 %v1180_v62 }
 0x33f   :  { %1183 = vmatpush3.bf16.msra.mxu1 %v1182_v1 }
 0x342   :  { %763 = vmatmul.mubr.f32.vlgmr.msra.gmra.mrb[8].mxu1 %v1632_v18 }
 0x343   :  { %767 = vmatprep.mubr.f32.mxu1 %v538_v32 }
 0x346   :  { %768 = vmatmul.mubr.f32.gmra.mrb[10].mxu1 %v537_v30 }
 0x3f5   :  { %v913_v2 = vpop.f32.mrb[4].mxu1 }
 0x3f6   :  { %v914_v4 = vpop.f32.mrb[5].mxu1 }
 0x3f7   :  { %v915_v5 = vadd.f32 %v914_v4, %v913_v2 }
 0x3f9   :  { %v649_v6 = vadd.f32 %v915_v5, %v861_v3  ;;  %v916_v7 = vpop.f32.mrb[6].mxu1 }
 0x3fa   :  { %v917_v8 = vpop.f32.mrb[7].mxu1 }
 0x3fb   :  { %657 = vst [vmem:[#allocation14] sm:$0xff] %v649_v6  ;;  %v918_v9 = vadd.f32 %v917_v8, %v916_v7 }
 0x3fd   :  { %v654_v11 = vadd.f32 %v918_v9, %v861_v3 }
 0x3ff   :  { %658 = vst [vmem:[#allocation14 + $0x8] sm:$0xff] %v654_v11 }
 0x415   :  { %v951_v12 = vpop.f32.mrb[8].mxu1 }
 0x416   :  { %v952_v13 = vpop.f32.mrb[9].mxu1 }
 0x417   :  { %v953_v15 = vadd.f32 %v952_v13, %v951_v12 }
 0x419   :  { %v954_v16 = vpop.f32.mrb[10].mxu1  ;;  %v765_v17 = vadd.f32 %v953_v15, %v862_v14 }
 0x41a   :  { %v955_v18 = vpop.f32.mrb[11].mxu1 }
 0x41b   :  { %v956_v19 = vadd.f32 %v955_v18, %v954_v16  ;;  %773 = vmax.xlane.f32.xlu0 %v765_v17 }
 0x41d   :  { %v770_v20 = vadd.f32 %v956_v19, %v862_v14 }
 0x41f   :  { %775 = vmax.xlane.f32.xlu0 %v770_v20 }
 0x4a8   :  { %v774_v21 = vpop.xlane.xlu0 %773 }
 0x4a9   :  { %v777_v22 = vsub.f32 %v765_v17, %v774_v21 }
 0x4ab   :  { %v779_v23 = vmul.f32 1.442695, %v777_v22 }
 0x4ac   :  { %v776_v24 = vpop.xlane.xlu0 %775 }
 0x4ad   :  { %1199 = vpow2.f32 %v779_v23  ;;  %v778_v25 = vsub.f32 %v770_v20, %v776_v24 }
 0x4af   :  { %v781_v26 = vmul.f32 1.442695, %v778_v25 }
 0x4b1   :  { %1201 = vpow2.f32 %v781_v26 }
 0x4b7   :  { %v1200_v27 = vpop.eup %1199 }
 0x4b8   :  { %783 = vadd.xlane.f32.xlu1 %v1200_v27 }
 0x4bb   :  { %v1202_v28 = vpop.eup %1201 }
 0x4bc   :  { %785 = vadd.xlane.f32.xlu1 %v1202_v28 }
 0x4bd   :  { %1350 = shalt.err (!%p1347_p10)
}
 0x4be   :  { %s1351_s1 = scalar_lea.hbm %s1722_s12, 256 }
 0x4bf   :  { %p1352_p11 = scmp.ne.s32.totalorder %s1722_s12, %s1351_s1  ;;  %p1355_p12 = scmp.lt.u32.totalorder %s1351_s1, %s1722_s12 }
 0x4c1   :  { %p1357_p13 = pnand %p1355_p12, %p1352_p11 }
 0x4c3   :  { %1360 = shalt.err (!%p1357_p13)
}
 0x4c4   :  { %816 = dma.vmem_to_hbm [thread:$0]  %s811_s10, 256, %s1722_s12, [#allocation15], %s1442_s23, %s1442_s23, %s1443_s24  }
 0x4c5   :  { %s1361_s18 = scalar_lea.vmem %s1643_s0, 256  ;;  %p1366_p1 = scmp.lt.s32.totalorder %s1643_s0, %s1643_s0 }
 0x4c6   :  { %p1362_p0 = scmp.ne.s32.totalorder %s1643_s0, %s1361_s18  ;;  %p1367_p2 = scmp.lt.s32.totalorder %s1361_s18, %s1361_s18 }
 0x4c8   :  { %p1368_p3 = por %p1367_p2, %p1366_p1 }
 0x4ca   :  { %p1369_p4 = pnand %p1368_p3, %p1362_p0 }
 0x4cc   :  { %1372 = shalt.err (!%p1369_p4)
}
 0x4cd   :  { %s1373_s4 = scalar_lea.hbm %s1721_s11, 256 }
 0x4ce   :  { %p1374_p5 = scmp.ne.s32.totalorder %s1721_s11, %s1373_s4  ;;  %p1377_p6 = scmp.lt.u32.totalorder %s1373_s4, %s1721_s11 }
 0x4d0   :  { %p1379_p7 = pnand %p1377_p6, %p1374_p5 }
 0x4d2   :  { %1382 = shalt.err (!%p1379_p7)
}
 0x4d3   :  { %804 = dma.vmem_to_hbm [thread:$0]  %s1643_s0, 256, %s1721_s11, [#allocation4], %s1442_s23, %s1442_s23, %s1443_s24  }
 0x4d4   :  { %s1454_s8 = smov [#allocation17]  }
 0x4d5   :  { %s834_s10 = sshll.u32 %s1454_s8, 4  ;;  %s835_s10 = int_to_ptr.vmem [resolvable:$true] %s834_s10 }
 0x4d6   :  { %s1383_s22 = scalar_lea.vmem %s835_s10, 512  ;;  %p1388_p9 = scmp.lt.s32.totalorder %s835_s10, %s835_s10 }
 0x4d7   :  { %p1384_p8 = scmp.ne.s32.totalorder %s835_s10, %s1383_s22  ;;  %p1389_p10 = scmp.lt.s32.totalorder %s1383_s22, %s1383_s22 }
 0x4d9   :  { %p1390_p11 = por %p1389_p10, %p1388_p9 }
 0x4db   :  { %p1391_p12 = pnand %p1390_p11, %p1384_p8 }
 0x4dd   :  { %1394 = shalt.err (!%p1391_p12)
}
 0x4de   :  { %s1395_s28 = scalar_lea.hbm %s1724_s14, 512 }
 0x4df   :  { %p1396_p13 = scmp.ne.s32.totalorder %s1724_s14, %s1395_s28  ;;  %p1399_p0 = scmp.lt.u32.totalorder %s1395_s28, %s1724_s14 }
 0x4e1   :  { %p1401_p1 = pnand %p1399_p0, %p1396_p13 }
 0x4e3   :  { %1404 = shalt.err (!%p1401_p1)
}
 0x4e4   :  { %840 = dma.vmem_to_hbm [thread:$0]  %s835_s10, 512, %s1724_s14, [#allocation18], %s1446_s30, %s1446_s30, %s1447_s25  }
 0x4e5   :  { %s1455_s7 = smov [#allocation16]  }
 0x4e6   :  { %s822_s29 = sshll.u32 %s1455_s7, 4  ;;  %s823_s29 = int_to_ptr.vmem [resolvable:$true] %s822_s29 }
 0x4e7   :  { %s1405_s9 = scalar_lea.vmem %s823_s29, 256  ;;  %p1410_p3 = scmp.lt.s32.totalorder %s823_s29, %s823_s29 }
 0x4e8   :  { %p1406_p2 = scmp.ne.s32.totalorder %s823_s29, %s1405_s9  ;;  %p1411_p4 = scmp.lt.s32.totalorder %s1405_s9, %s1405_s9 }
 0x4ea   :  { %p1412_p5 = por %p1411_p4, %p1410_p3 }
 0x4ec   :  { %p1413_p6 = pnand %p1412_p5, %p1406_p2 }
 0x545   :  { %v784_v29 = vpop.xlane.xlu1 %783 }
 0x546   :  { %1203 = vrcp.f32 %v784_v29 }
 0x549   :  { %v786_v30 = vpop.xlane.xlu1 %785 }
 0x54a   :  { %1205 = vrcp.f32 %v786_v30 }
 0x550   :  { %v1204_v31 = vpop.eup %1203 }
 0x551   :  { %v789_v32 = vmul.f32 %v1204_v31, %v1200_v27 }
 0x553   :  { %791 = vst [vmem:[#allocation16] sm:$0xff] %v789_v32 }
 0x554   :  { %v1206_v33 = vpop.eup %1205 }
 0x555   :  { %v790_v34 = vmul.f32 %v1206_v33, %v1202_v28 }
 0x557   :  { %792 = vst [vmem:[#allocation16 + $0x8] sm:$0xff] %v790_v34 }
 0x558   :  { %1416 = shalt.err (!%p1413_p6)
}
 0x559   :  { %s1417_s25 = scalar_lea.hbm %s1723_s13, 256 }
 0x55a   :  { %p1418_p7 = scmp.ne.s32.totalorder %s1723_s13, %s1417_s25  ;;  %p1421_p8 = scmp.lt.u32.totalorder %s1417_s25, %s1723_s13 }
 0x55c   :  { %p1423_p9 = pnand %p1421_p8, %p1418_p7 }
 0x55e   :  { %1426 = shalt.err (!%p1423_p9)
}
 0x55f   :  { %828 = dma.vmem_to_hbm [thread:$0]  %s823_s29, 256, %s1723_s13, [#allocation15], %s1442_s23, %s1442_s23, %s1443_s24  }
 0x560   :  { %1435 = dma.done.wait [#allocation4], 256  }
 0x561   :  { %1436 = vsyncadd [#allocation4], 4294967040 }
 0x562   :  { %1437 = dma.done.wait [#allocation15], 512  }
 0x563   :  { %1438 = vsyncadd [#allocation15], 4294966784 }
 0x564   :  { %1439 = dma.done.wait [#allocation18], 512  }
 0x565   :  { %1440 = vsyncadd [#allocation18], 4294966784 }
 0x566   :  { %853 = vsyncpa [#allocation3], 1 }
 0x567   :  { %854 = vsyncpa [#allocation6], 1 }
 0x568   :  { %855 = vsyncpa [#allocation9], 1 }
 0x569   :  { %856 = vsyncpa [#allocation12], 1 }
 0x56a   :  { %857 = vsyncpa [#allocation4], 1 }
 0x56b   :  { %858 = vsyncpa [#allocation15], 1 }
 0x56c   :  { %859 = vsyncpa [#allocation18], 1 }

</bundles_post_ra>
